<compile_context>
chip_gen: v6e
topology: v6e:2x2x1
jax: 0.10.0
libtpu: 0.0.40
codegen_flags: <defaults>
</compile_context>

<pallas_src>
import functools

import jax
import jax.numpy as jnp
from jax import lax
from jax.experimental import pallas as pl
from jax.experimental.pallas import tpu as pltpu

_LANE = 128


def _dice_partials_kernel(tr, acc_rows, valid_rows, tiles_per_core,
                          may_overhang, p_ref, t_ref, inter_ref, union_ref):
    """Grid = (core, row_tile): axis 0 "parallel" (megacore), axis 1 "arbitrary".

    p_ref/t_ref:       (tr, 128) input tiles (original dtype).
    inter_ref/union_ref: (acc_rows, 128) f32 slabs, resident per core across
    axis 1 (running elementwise sums of p*t and p+t).
    """
    c = pl.program_id(0)
    i = pl.program_id(1)

    @pl.when(i == 0)
    def _():
        inter_ref[...] = jnp.zeros_like(inter_ref)
        union_ref[...] = jnp.zeros_like(union_ref)

    groups = tr // acc_rows
    tile_row0 = (c * tiles_per_core + i) * tr   # global row index of tile top

    def chunk(g, masked):
        r0 = g * acc_rows
        if groups > 1:
            r0 = pl.multiple_of(r0, acc_rows)
        ps = p_ref[pl.ds(r0, acc_rows), :].astype(jnp.float32)
        ts = t_ref[pl.ds(r0, acc_rows), :].astype(jnp.float32)
        pt = ps * ts          # intersection contribution
        pu = ps + ts          # union contribution (sum(p) + sum(t) fused)
        if masked:
            row_ids = tile_row0 + g * acc_rows + lax.broadcasted_iota(
                jnp.int32, (acc_rows, _LANE), 0)
            valid = row_ids < valid_rows
            pt = jnp.where(valid, pt, 0.0)
            pu = jnp.where(valid, pu, 0.0)
        return pt, pu

    def accumulate(masked):
        if groups == 1:
            pt, pu = chunk(0, masked)
            inter_ref[...] += pt
            union_ref[...] += pu
        else:
            def body(g, carry):
                acc_i, acc_u = carry
                pt, pu = chunk(g, masked)
                return acc_i + pt, acc_u + pu

            zero = jnp.zeros((acc_rows, _LANE), jnp.float32)
            acc_i, acc_u = lax.fori_loop(0, groups, body, (zero, zero))
            inter_ref[...] += acc_i
            union_ref[...] += acc_u

    if may_overhang:
        # Only overhanging tiles (ragged last real tile and the at-most-one
        # fully out-of-range tile of the odd-tile-count core) pay the mask.
        overhangs = tile_row0 + tr > valid_rows

        @pl.when(tile_row0 + tr <= valid_rows)
        def _():
            accumulate(masked=False)

        @pl.when(overhangs)
        def _():
            accumulate(masked=True)
    else:
        accumulate(masked=False)


def _sublane_multiple(dtype):
    # Sub-32-bit dtypes pack along sublanes: bf16 rows travel in 16s, int8 in 32s.
    return max(8, 32 // jnp.dtype(dtype).itemsize)


def dice_loss(prediction, target, eps=1e-06, *, tile_rows=4096, num_cores=2):
    """1 - DiceCoefficient; matches the PyTorch DiceLoss.forward semantics."""
    assert prediction.shape == target.shape, "prediction/target must match"

    p_flat = jnp.ravel(prediction)
    t_flat = jnp.ravel(target)
    n = p_flat.shape[0]

    rows = n // _LANE
    main = rows * _LANE

    # <128-element lane tail: summed in plain JAX (no jnp.pad copy of the full
    # arrays as in the previous revision).
    if main != n:
        p_tail = p_flat[main:].astype(jnp.float32)
        t_tail = t_flat[main:].astype(jnp.float32)
        tail_inter = jnp.sum(p_tail * t_tail)
        tail_union = jnp.sum(p_tail) + jnp.sum(t_tail)
    else:
        tail_inter = jnp.float32(0.0)
        tail_union = jnp.float32(0.0)

    if rows == 0:
        intersection = tail_inter
        union = tail_union
    else:
        # Contiguous (rows, 128) view; for lane-aligned n this is a pure
        # reshape (bitcast).  Only ragged-lane n pays a prefix slice.
        p2 = p_flat[:main].reshape(rows, _LANE)
        t2 = t_flat[:main].reshape(rows, _LANE)

        # Row tile: as big as allowed, sublane-aligned for the input dtypes so
        # the (tr, 128) block obeys the packing tile rule.
        row_align = max(_sublane_multiple(p2.dtype), _sublane_multiple(t2.dtype))
        if rows >= row_align:
            tr = max(row_align, (min(tile_rows, rows) // row_align) * row_align)
        else:
            tr = rows          # block == full first dim: always legal

        # Accumulator slab height: largest divisor of tr up to 64 (VPU ILP).
        acc_rows = tr
        for cand in (64, 32, 16, 8):
            if tr % cand == 0:
                acc_rows = cand
                break

        nt = pl.cdiv(rows, tr)                 # number of real row tiles
        ncores = num_cores if nt >= 2 else 1   # dual-TC split only if >1 tile
        tpc = pl.cdiv(nt, ncores)              # tiles per core (rectangular grid)

        has_oob_tiles = ncores * tpc > nt      # at most one fully OOB tile
        ragged_rows = (rows % tr) != 0         # last real tile hangs past rows
        may_overhang = has_oob_tiles or ragged_rows

        def in_index(c, i):
            g = c * tpc + i
            if has_oob_tiles:
                g = jnp.minimum(g, nt - 1)     # keep the DMA window in-bounds
            return (g, 0)

        kernel = functools.partial(_dice_partials_kernel, tr, acc_rows, rows,
                                   tpc, may_overhang)

        inter_slabs, union_slabs = pl.pallas_call(
            kernel,
            out_shape=(
                jax.ShapeDtypeStruct((ncores, acc_rows, _LANE), jnp.float32),
                jax.ShapeDtypeStruct((ncores, acc_rows, _LANE), jnp.float32),
            ),
            grid_spec=pltpu.PrefetchScalarGridSpec(
                num_scalar_prefetch=0,
                grid=(ncores, tpc),
                in_specs=[
                    # TODO(synk): sweep pipeline_mode=pl.Buffered(3) here if a
                    # profile shows exposed DMA at this tile size.
                    pl.BlockSpec((tr, _LANE), in_index),
                    pl.BlockSpec((tr, _LANE), in_index),
                ],
                out_specs=(
                    pl.BlockSpec((None, acc_rows, _LANE), lambda c, i: (c, 0, 0)),
                    pl.BlockSpec((None, acc_rows, _LANE), lambda c, i: (c, 0, 0)),
                ),
            ),
            compiler_params=pltpu.CompilerParams(
                dimension_semantics=("parallel", "arbitrary"),
                vmem_limit_bytes=32 * 1024 * 1024,  # safe on v5e/v6e/v7x
            ),
        )(p2, t2)

        intersection = jnp.sum(inter_slabs) + tail_inter
        union = jnp.sum(union_slabs) + tail_union

    # torch: 1 - 2 * intersection / union.clamp(min=eps)
    return (1.0 - 2.0 * intersection
            / jnp.maximum(union, jnp.float32(eps))).astype(jnp.float32)


def dice_loss_ref(prediction, target, eps=1e-06):
    """Pure-JAX reference (mirrors the PyTorch code)."""
    intersection = jnp.sum(prediction * target)
    union = jnp.sum(prediction) + jnp.sum(target)
    return 1.0 - 2.0 * intersection / jnp.maximum(union, eps)


if __name__ == "__main__":
    key = jax.random.PRNGKey(0)
    k1, k2, k3, k4 = jax.random.split(key, 4)

    # Primary check: dense NCHW-style input (lane-aligned fast path).
    shape = (2, 4, 16, 16)  # N, C, H, W
    prediction = jax.nn.sigmoid(jax.random.normal(k1, shape, dtype=jnp.float32))
    target = (jax.random.uniform(k2, shape, dtype=jnp.float32) > 0.5).astype(
        jnp.float32)
    loss = jax.block_until_ready(dice_loss(prediction, target))
    ref = dice_loss_ref(prediction, target)
    assert jnp.allclose(loss, ref, atol=1e-5, rtol=1e-5), (loss, ref)

    # Secondary check: ragged rows + lane tail + dual-slab / masked-tile path.
    shape2 = (3, 5, 7, 11)  # 1155 elements: 9 full lanes + 3-element tail
    prediction2 = jax.nn.sigmoid(jax.random.normal(k3, shape2, dtype=jnp.float32))
    target2 = (jax.random.uniform(k4, shape2, dtype=jnp.float32) > 0.5).astype(
        jnp.float32)
    loss2 = jax.block_until_ready(dice_loss(prediction2, target2))
    ref2 = dice_loss_ref(prediction2, target2)
    assert jnp.allclose(loss2, ref2, atol=1e-5, rtol=1e-5), (loss2, ref2)

    print("KERNEL_OK")
</pallas_src>

<mosaic_0001>
module attributes {stable_mosaic.version = 11 : i64} {
  func.func @_dice_partials_kernel(%arg0: i32, %arg1: i32, %arg2: memref<16x128xf32, #tpu.memory_space<vmem>>, %arg3: memref<16x128xf32, #tpu.memory_space<vmem>>, %arg4: memref<1x16x128xf32, #tpu.memory_space<vmem>>, %arg5: memref<1x16x128xf32, #tpu.memory_space<vmem>>) attributes {dimension_semantics = [#tpu.dimension_semantics<parallel>, #tpu.dimension_semantics<arbitrary>], iteration_bounds = array<i64: 1, 1>, scalar_prefetch = 0 : i64, scratch_operands = 0 : i64, tpu.core_type = #tpu.core_type<tc>, window_params = [{transform_indices = @transform_0, window_bounds = array<i64: 16, 128>}, {transform_indices = @transform_1, window_bounds = array<i64: 16, 128>}, {transform_indices = @transform_2, window_bounds = array<i64: 1, 16, 128>}, {transform_indices = @transform_3, window_bounds = array<i64: 1, 16, 128>}]} {
    %c0_i32 = arith.constant 0 : i32
    %0 = arith.cmpi eq, %arg1, %c0_i32 : i32
    %1 = arith.extui %0 : i1 to i32
    %c0_i32_0 = arith.constant 0 : i32
    %2 = arith.cmpi ne, %1, %c0_i32_0 : i32
    scf.if %2 {
      %cst = arith.constant 0.000000e+00 : f32
      %19 = vector.broadcast %cst : f32 to vector<16x128xf32>
      %c0_16 = arith.constant 0 : index
      %c0_17 = arith.constant 0 : index
      %c0_18 = arith.constant 0 : index
      %20 = vector.load %arg4[%c0_16, %c0_17, %c0_18] : memref<1x16x128xf32, #tpu.memory_space<vmem>>, vector<1x16x128xf32>
      %21 = vector.shape_cast %20 : vector<1x16x128xf32> to vector<16x128xf32>
      %22 = vector.shape_cast %19 : vector<16x128xf32> to vector<1x16x128xf32>
      tpu.vector_store %arg4[%c0_16, %c0_17, %c0_18], %22 {strides = array<i32>} : memref<1x16x128xf32, #tpu.memory_space<vmem>>, vector<1x16x128xf32>,
      %cst_19 = arith.constant 0.000000e+00 : f32
      %23 = vector.broadcast %cst_19 : f32 to vector<16x128xf32>
      %c0_20 = arith.constant 0 : index
      %c0_21 = arith.constant 0 : index
      %c0_22 = arith.constant 0 : index
      %24 = vector.load %arg5[%c0_20, %c0_21, %c0_22] : memref<1x16x128xf32, #tpu.memory_space<vmem>>, vector<1x16x128xf32>
      %25 = vector.shape_cast %24 : vector<1x16x128xf32> to vector<16x128xf32>
      %26 = vector.shape_cast %23 : vector<16x128xf32> to vector<1x16x128xf32>
      tpu.vector_store %arg5[%c0_20, %c0_21, %c0_22], %26 {strides = array<i32>} : memref<1x16x128xf32, #tpu.memory_space<vmem>>, vector<1x16x128xf32>,
    } else {
    }
    %c0 = arith.constant 0 : index
    %c0_1 = arith.constant 0 : index
    %3 = vector.load %arg2[%c0, %c0_1] : memref<16x128xf32, #tpu.memory_space<vmem>>, vector<16x128xf32>
    %c0_2 = arith.constant 0 : index
    %c0_3 = arith.constant 0 : index
    %4 = vector.load %arg3[%c0_2, %c0_3] : memref<16x128xf32, #tpu.memory_space<vmem>>, vector<16x128xf32>
    %5 = arith.mulf %3, %4 : vector<16x128xf32>
    %6 = arith.addf %3, %4 : vector<16x128xf32>
    %c0_4 = arith.constant 0 : index
    %c0_5 = arith.constant 0 : index
    %c0_6 = arith.constant 0 : index
    %7 = vector.load %arg4[%c0_4, %c0_5, %c0_6] : memref<1x16x128xf32, #tpu.memory_space<vmem>>, vector<1x16x128xf32>
    %8 = vector.shape_cast %7 : vector<1x16x128xf32> to vector<16x128xf32>
    %9 = arith.addf %8, %5 : vector<16x128xf32>
    %c0_7 = arith.constant 0 : index
    %c0_8 = arith.constant 0 : index
    %c0_9 = arith.constant 0 : index
    %10 = vector.load %arg4[%c0_7, %c0_8, %c0_9] : memref<1x16x128xf32, #tpu.memory_space<vmem>>, vector<1x16x128xf32>
    %11 = vector.shape_cast %10 : vector<1x16x128xf32> to vector<16x128xf32>
    %12 = vector.shape_cast %9 : vector<16x128xf32> to vector<1x16x128xf32>
    tpu.vector_store %arg4[%c0_7, %c0_8, %c0_9], %12 {strides = array<i32>} : memref<1x16x128xf32, #tpu.memory_space<vmem>>, vector<1x16x128xf32>,
    %c0_10 = arith.constant 0 : index
    %c0_11 = arith.constant 0 : index
    %c0_12 = arith.constant 0 : index
    %13 = vector.load %arg5[%c0_10, %c0_11, %c0_12] : memref<1x16x128xf32, #tpu.memory_space<vmem>>, vector<1x16x128xf32>
    %14 = vector.shape_cast %13 : vector<1x16x128xf32> to vector<16x128xf32>
    %15 = arith.addf %14, %6 : vector<16x128xf32>
    %c0_13 = arith.constant 0 : index
    %c0_14 = arith.constant 0 : index
    %c0_15 = arith.constant 0 : index
    %16 = vector.load %arg5[%c0_13, %c0_14, %c0_15] : memref<1x16x128xf32, #tpu.memory_space<vmem>>, vector<1x16x128xf32>
    %17 = vector.shape_cast %16 : vector<1x16x128xf32> to vector<16x128xf32>
    %18 = vector.shape_cast %15 : vector<16x128xf32> to vector<1x16x128xf32>
    tpu.vector_store %arg5[%c0_13, %c0_14, %c0_15], %18 {strides = array<i32>} : memref<1x16x128xf32, #tpu.memory_space<vmem>>, vector<1x16x128xf32>,
    return
  }
  func.func @transform_0(%arg0: i32, %arg1: i32) -> (i32, i32) {
    %c1_i32 = arith.constant 1 : i32
    %0 = arith.muli %arg0, %c1_i32 : i32
    %1 = arith.addi %0, %arg1 : i32
    %c0_i32 = arith.constant 0 : i32
    %c0_i32_0 = arith.constant 0 : i32
    return %1, %c0_i32 : i32, i32
  }
  func.func @transform_1(%arg0: i32, %arg1: i32) -> (i32, i32) {
    %c1_i32 = arith.constant 1 : i32
    %0 = arith.muli %arg0, %c1_i32 : i32
    %1 = arith.addi %0, %arg1 : i32
    %c0_i32 = arith.constant 0 : i32
    %c0_i32_0 = arith.constant 0 : i32
    return %1, %c0_i32 : i32, i32
  }
  func.func @transform_2(%arg0: i32, %arg1: i32) -> (i32, i32, i32) {
    %c0_i32 = arith.constant 0 : i32
    %c0_i32_0 = arith.constant 0 : i32
    %c0_i32_1 = arith.constant 0 : i32
    return %arg0, %c0_i32, %c0_i32_0 : i32, i32, i32
  }
  func.func @transform_3(%arg0: i32, %arg1: i32) -> (i32, i32, i32) {
    %c0_i32 = arith.constant 0 : i32
    %c0_i32_0 = arith.constant 0 : i32
    %c0_i32_1 = arith.constant 0 : i32
    return %arg0, %c0_i32, %c0_i32_0 : i32, i32, i32
  }
}

</mosaic_0001>

<bundles_post_ra>
// kernel: tpu_custom_call.1
= control target key start
LH: loop header
LB: loop body
LE: loop exit
PB: predicated region body
PF: predicated region fallthrough
CT: control target
= control target key end

     0   :  { %9 = vsyncpa [#allocation3], 0  ;;  %s262_s0 = inlined_call_operand.hbm [shape: f32[16,128], index: 0, kind: input, shape index: {}]   ;;  %s263_s1 = inlined_call_operand.hbm [shape: f32[16,128], index: 1, kind: input, shape index: {}]   ;;  %s264_s2 = inlined_call_operand.hbm [shape: f32[1,16,128], index: 2, kind: output, shape index: {0}]   ;;  %s265_s3 = inlined_call_operand.hbm [shape: f32[1,16,128], index: 3, kind: output, shape index: {1}]  }
   0x1   :  { %10 = vsyncpa [#allocation6], 0 }
   0x2   :  { %11 = vsyncpa [#allocation4], 0 }
   0x3   :  { %12 = vsyncpa [#allocation9], 0  ;;  %s212_s12 = smov [#allocation2]  }
   0x4   :  { %s22_s13 = sshll.u32 %s212_s12, 4  ;;  %s23_s13 = int_to_ptr.vmem [resolvable:$true] %s22_s13 }
   0x5   :  { %s132_s14 = scalar_lea.vmem %s23_s13, 256  ;;  %p137_p1 = scmp.lt.s32.totalorder %s23_s13, %s23_s13 }
   0x6   :  { %p133_p0 = scmp.ne.s32.totalorder %s23_s13, %s132_s14  ;;  %p138_p2 = scmp.lt.s32.totalorder %s132_s14, %s132_s14 }
   0x8   :  { %p139_p3 = por %p138_p2, %p137_p1 }
   0xa   :  { %p140_p4 = pnand %p139_p3, %p133_p0 }
   0xc   :  { %143 = shalt.err (!%p140_p4)
}
   0xd   :  { %s213_s15 = smov 128   ;;  %s214_s16 = smov 8  }
   0xe   :  { %28 = dma.hbm_to_vmem [thread:$0]  %s262_s0, 256, %s23_s13, [#allocation3], %s213_s15, %s213_s15, %s214_s16  }
   0xf   :  { %s215_s19 = smov [#allocation5]  }
  0x10   :  { %s38_s20 = sshll.u32 %s215_s19, 4  ;;  %s39_s20 = int_to_ptr.vmem [resolvable:$true] %s38_s20 }
  0x11   :  { %s152_s21 = scalar_lea.vmem %s39_s20, 256  ;;  %p157_p6 = scmp.lt.s32.totalorder %s39_s20, %s39_s20 }
  0x12   :  { %p153_p5 = scmp.ne.s32.totalorder %s39_s20, %s152_s21  ;;  %p158_p7 = scmp.lt.s32.totalorder %s152_s21, %s152_s21 }
  0x14   :  { %p159_p8 = por %p158_p7, %p157_p6 }
  0x16   :  { %p160_p9 = pnand %p159_p8, %p153_p5 }
  0x18   :  { %163 = shalt.err (!%p160_p9)
}
  0x19   :  { %44 = dma.hbm_to_vmem [thread:$0]  %s263_s1, 256, %s39_s20, [#allocation6], %s213_s15, %s213_s15, %s214_s16  }
  0x1a   :  { %204 = dma.done.wait [#allocation3], 256  }
  0x1b   :  { %205 = vsyncadd [#allocation3], 4294967040 }
  0x1c   :  { %206 = dma.done.wait [#allocation6], 256  }
  0x1d   :  { %207 = vsyncadd [#allocation6], 4294967040  ;;  %v63_v0 = vld [vmem:[#allocation2] sm:$0xff]  ;;  %v65_v1 = vld [vmem:[#allocation5] sm:$0xff]  ;;  %s216_s0 = smov [#allocation7]   ;;  %s217_s25 = smov [#allocation8]  }
  0x1e   :  { %v64_v2 = vld [vmem:[#allocation2 + $0x8] sm:$0xff]  ;;  %v67_v3 = vmul.f32 %v65_v1, %v63_v0  ;;  %v66_v4 = vld [vmem:[#allocation5 + $0x8] sm:$0xff]  ;;  %v69_v5 = vadd.f32 %v65_v1, %v63_v0  ;;  %s88_s24 = sshll.u32 %s216_s0, 4  ;;  %s100_s26 = sshll.u32 %s217_s25, 4  ;;  %s89_s24 = int_to_ptr.vmem [resolvable:$true] %s88_s24  ;;  %s101_s26 = int_to_ptr.vmem [resolvable:$true] %s100_s26 }
  0x1f   :  { %v68_v6 = vmul.f32 %v66_v4, %v64_v2  ;;  %v70_v7 = vadd.f32 %v66_v4, %v64_v2  ;;  %s164_s1 = scalar_lea.vmem %s89_s24, 256  ;;  %p169_p11 = scmp.lt.s32.totalorder %s89_s24, %s89_s24 }
  0x20   :  { %75 = vst [vmem:[#allocation7] sm:$0xff] %v67_v3  ;;  %81 = vst [vmem:[#allocation8] sm:$0xff] %v69_v5  ;;  %p165_p10 = scmp.ne.s32.totalorder %s89_s24, %s164_s1  ;;  %p170_p12 = scmp.lt.s32.totalorder %s164_s1, %s164_s1 }
  0x21   :  { %76 = vst [vmem:[#allocation7 + $0x8] sm:$0xff] %v68_v6  ;;  %82 = vst [vmem:[#allocation8 + $0x8] sm:$0xff] %v70_v7 }
  0x22   :  { %p171_p13 = por %p170_p12, %p169_p11 }
  0x24   :  { %p172_p0 = pnand %p171_p13, %p165_p10 }
  0x26   :  { %175 = shalt.err (!%p172_p0)
}
  0x27   :  { %94 = dma.vmem_to_hbm [thread:$0]  %s89_s24, 256, %s264_s2, [#allocation4], %s213_s15, %s213_s15, %s214_s16  }
  0x28   :  { %s184_s29 = scalar_lea.vmem %s101_s26, 256  ;;  %p189_p2 = scmp.lt.s32.totalorder %s101_s26, %s101_s26 }
  0x29   :  { %p185_p1 = scmp.ne.s32.totalorder %s101_s26, %s184_s29  ;;  %p190_p3 = scmp.lt.s32.totalorder %s184_s29, %s184_s29 }
  0x2b   :  { %p191_p4 = por %p190_p3, %p189_p2 }
  0x2d   :  { %p192_p5 = pnand %p191_p4, %p185_p1 }
  0x2f   :  { %195 = shalt.err (!%p192_p5)
}
  0x30   :  { %106 = dma.vmem_to_hbm [thread:$0]  %s101_s26, 256, %s265_s3, [#allocation9], %s213_s15, %s213_s15, %s214_s16  }
  0x31   :  { %208 = dma.done.wait [#allocation4], 256  }
  0x32   :  { %209 = vsyncadd [#allocation4], 4294967040 }
  0x33   :  { %210 = dma.done.wait [#allocation9], 256  }
  0x34   :  { %211 = vsyncadd [#allocation9], 4294967040 }
  0x35   :  { %113 = vsyncpa [#allocation3], 1 }
  0x36   :  { %114 = vsyncpa [#allocation6], 1 }
  0x37   :  { %115 = vsyncpa [#allocation4], 1 }
  0x38   :  { %116 = vsyncpa [#allocation9], 1 }

</bundles_post_ra>
